<compile_context>
chip_gen: v6e
topology: v6e:2x2x1
jax: 0.10.0
libtpu: 0.0.40
codegen_flags: <defaults>
</compile_context>

<pallas_src>
import functools

import jax
import jax.numpy as jnp
from jax.experimental import pallas as pl
from jax.experimental.pallas import tpu as pltpu


def _round_up(x, m):
    return ((x + m - 1) // m) * m


def _auto_tile_n(n, h_dim, m_dim, hid_itemsize, compute_itemsize):
    """Largest 128-multiple row tile whose per-step buffers (double-buffered
    hid block, in-kernel compute-dtype copy, f32 hidden activations and their
    compute-dtype re-cast, double-buffered (1, TILE_N) f32 loss outputs) stay
    near ~16 MiB, so an explicit 32-40 MiB vmem_limit_bytes covers every
    generation (v7x only has 64 MiB physical VMEM per TensorCore)."""
    budget = 16 * 1024 * 1024
    per_row = (2 * h_dim * hid_itemsize            # hid block, double-buffered
               + h_dim * compute_itemsize          # in-kernel cast copy
               + m_dim * (4 + compute_itemsize)    # h (f32) + re-cast for MXU
               + 2 * 2 * 4                         # two f32 outputs, dbl-buf
               + 16)                               # logits / softplus temps
    tile = budget // max(per_row, 1)
    tile = max(128, min(16384, (tile // 128) * 128))
    return min(tile, _round_up(n, 128))


def _xling_disc_kernel(hid_ref, w1_ref, b1_ref, w2_ref, b2_ref,
                       loss_t1_ref, loss_t0_ref, *, compute_dtype):
    # hid_ref : (TILE_N, H)  activations for this tile (streamed, any dtype)
    # w1_ref  : (H, M)       first-layer weight, compute dtype (VMEM-resident)
    # b1_ref  : (1, M) f32   first-layer bias row (resident)
    # w2_ref  : (M, 1)       second-layer weight column, compute dtype
    # b2_ref  : (1, 1) f32   second-layer bias (SMEM scalar)
    # loss_*  : (1, TILE_N)  lane-dense f32 loss blocks
    x = hid_ref[...].astype(compute_dtype)                         # (TILE_N, H)

    # Layer 1 on the MXU in natural orientation, f32 accumulation.
    h = jnp.dot(x, w1_ref[...], preferred_element_type=jnp.float32)
    h = jnp.maximum(h + b1_ref[...], 0.0)                          # (TILE_N, M)

    # Width-1 layer 2 also on the (otherwise idle) MXU -- keeps the XLU free.
    o_col = jnp.dot(h.astype(compute_dtype), w2_ref[...],
                    preferred_element_type=jnp.float32) + b2_ref[0, 0]
    o = o_col.T            # tiny (TILE_N,1) -> (1,TILE_N) transpose of logits

    # Numerically-stable BCE-with-logits, reduction='none':
    #   loss(o, t) = max(o, 0) - o*t + log1p(exp(-|o|))
    #   t=1 -> softplus(-o);   t=0 -> o + softplus(-o)
    sp_neg_o = jnp.maximum(-o, 0.0) + jnp.log1p(jnp.exp(-jnp.abs(o)))
    loss_t1_ref[...] = sp_neg_o            # target = 1 (all-ones labels)
    loss_t0_ref[...] = o + sp_neg_o        # target = 0 (all-zeros labels)


def xling_discriminator_losses(hid, w1, b1, w2, b2, *, tile_n=None,
                               matmul_dtype=jnp.bfloat16,
                               core_parallel=False):
    """Returns (loss_target1, loss_target0), each shaped [N, 1] float32.

    hid: [N, H] (pass bf16 to halve HBM read traffic; the kernel is
    HBM-read-bound); w1: [H, M]; b1: [M]-like; w2: [M, 1]-like; b2: scalar.
    matmul_dtype=bf16 is an intentional precision trade vs the f32 PyTorch
    reference (MXU input dtype only; accumulation stays f32).
    """
    n, h_dim = hid.shape
    m_dim = w1.shape[1]
    comp_size = jnp.dtype(matmul_dtype).itemsize

    if tile_n is None:
        tile_n = _auto_tile_n(n, h_dim, m_dim, hid.dtype.itemsize, comp_size)
    tile_n = max(128, _round_up(tile_n, 128))
    num_tiles = pl.cdiv(n, tile_n)          # ragged last block: no jnp.pad

    # Tiny one-time weight plumbing (VMEM-resident across the whole grid).
    w1c = jnp.asarray(w1, jnp.float32).astype(matmul_dtype)           # (H, M)
    b1r = jnp.asarray(b1, jnp.float32).reshape(1, m_dim)              # (1, M)
    w2c = jnp.asarray(w2, jnp.float32).astype(matmul_dtype).reshape(m_dim, 1)
    b2s = jnp.asarray(b2, jnp.float32).reshape(1, 1)                  # (1, 1)

    out_sds = jax.ShapeDtypeStruct((1, n), jnp.float32)

    grid_spec = pltpu.PrefetchScalarGridSpec(
        num_scalar_prefetch=0,
        grid=(num_tiles,),
        in_specs=[
            # Streamed activations: one (TILE_N, H) block per grid step.
            # TODO(synk): if blocks remain small in production, consider
            # pipeline_mode=pl.Buffered(3) here to deepen the DMA pipeline.
            pl.BlockSpec((tile_n, h_dim), lambda i: (i, 0)),
            # Weights/biases: constant block index -> fetched once, resident.
            pl.BlockSpec((h_dim, m_dim), lambda i: (0, 0)),
            pl.BlockSpec((1, m_dim), lambda i: (0, 0)),
            pl.BlockSpec((m_dim, 1), lambda i: (0, 0)),
            # b2 scalar lives in SMEM (no per-step vector DMA descriptor).
            pl.BlockSpec(memory_space=pltpu.MemorySpace.SMEM),
        ],
        out_specs=(
            # Lane-dense (1, TILE_N) output blocks -> unmasked vector stores.
            pl.BlockSpec((1, tile_n), lambda i: (0, i)),
            pl.BlockSpec((1, tile_n), lambda i: (0, i)),
        ),
    )

    # Explicit scoped-VMEM limit sized to the actual buffers (2x headroom for
    # compiler temporaries), capped well under v7x's 64 MiB physical VMEM.
    est_bytes = (2 * tile_n * h_dim * hid.dtype.itemsize
                 + tile_n * h_dim * comp_size
                 + tile_n * m_dim * (4 + comp_size)
                 + 2 * 2 * tile_n * 4
                 + 2 * (h_dim * m_dim * comp_size + m_dim * (4 + comp_size))
                 + (1 << 16))
    vmem_limit = int(min(max(2 * est_bytes, 32 * 1024 * 1024),
                         40 * 1024 * 1024))

    # On v7x pass core_parallel=True so the N axis is sharded across the two
    # TensorCores (each with its own HBM/DMA path).
    dim_sem = (pltpu.CORE_PARALLEL,) if core_parallel else ("parallel",)

    loss_t1, loss_t0 = pl.pallas_call(
        functools.partial(_xling_disc_kernel, compute_dtype=matmul_dtype),
        out_shape=(out_sds, out_sds),
        grid_spec=grid_spec,
        compiler_params=pltpu.CompilerParams(
            dimension_semantics=dim_sem,
            vmem_limit_bytes=vmem_limit),
    )(hid, w1c, b1r, w2c, b2s)

    # Back to the module's [N, 1] shape (tiny wrapper-side reshape).
    return loss_t1.reshape(n, 1), loss_t0.reshape(n, 1)


class XlingDiscriminatorPallas:
    """JAX/Pallas port of XlingDiscriminator (forward only)."""

    def __init__(self, in_dim, mlp_hidden, dis_lang, key):
        k1, k2, k3, k4 = jax.random.split(key, 4)
        # Deterministic synthetic initialization (Kaiming-ish scale).
        self.w1 = (jax.random.normal(k1, (in_dim, mlp_hidden), jnp.float32)
                   * (1.0 / jnp.sqrt(in_dim)))
        self.b1 = jax.random.normal(k2, (mlp_hidden,), jnp.float32) * 0.01
        self.w2 = (jax.random.normal(k3, (mlp_hidden, 1), jnp.float32)
                   * (1.0 / jnp.sqrt(mlp_hidden)))
        self.b2 = jax.random.normal(k4, (1, 1), jnp.float32) * 0.01
        self.dis_lang = dis_lang

    def __call__(self, lang, hid, tile_n=None, core_parallel=False):
        loss_t1, loss_t0 = xling_discriminator_losses(
            hid, self.w1, self.b1, self.w2, self.b2, tile_n=tile_n,
            core_parallel=core_parallel)
        # lang == dis_lang is Python-level string glue (same as the module).
        if lang == self.dis_lang:
            return loss_t1, loss_t0    # dis_label = ones
        else:
            return loss_t0, loss_t1    # dis_label = zeros


def _reference(hid, w1, b1, w2, b2, dis_is_one, matmul_dtype=jnp.bfloat16):
    """Pure-JAX reference mirroring the kernel's cast structure.
    matmul_dtype=float32 gives the torch-exact math."""
    cd = matmul_dtype
    w1c = jnp.asarray(w1, jnp.float32).astype(cd)
    w2c = jnp.asarray(w2, jnp.float32).astype(cd).reshape(-1, 1)
    b1r = jnp.asarray(b1, jnp.float32).reshape(1, -1)
    b2s = jnp.asarray(b2, jnp.float32).reshape(1, 1)
    h = jnp.maximum(
        jnp.dot(hid.astype(cd), w1c, preferred_element_type=jnp.float32)
        + b1r, 0.0)
    o = jnp.dot(h.astype(cd), w2c, preferred_element_type=jnp.float32) + b2s
    sp_neg_o = jnp.maximum(-o, 0.0) + jnp.log1p(jnp.exp(-jnp.abs(o)))
    loss_t1, loss_t0 = sp_neg_o, o + sp_neg_o
    return (loss_t1, loss_t0) if dis_is_one else (loss_t0, loss_t1)


if __name__ == "__main__":
    key = jax.random.PRNGKey(0)
    k_model, k_hid_a, k_hid_b = jax.random.split(key, 3)

    H, M = 32, 64
    model = XlingDiscriminatorPallas(in_dim=H, mlp_hidden=M,
                                     dis_lang="en", key=k_model)

    # --- Case A: lang matches dis_lang, f32 hid, multi-tile grid (3x128) ---
    N_a = 384
    hid_a = jax.random.normal(k_hid_a, (N_a, H), jnp.float32)
    loss_dis_a, loss_enc_a = model("en", hid_a, tile_n=128)
    jax.block_until_ready((loss_dis_a, loss_enc_a))

    ref_dis_a, ref_enc_a = _reference(hid_a, model.w1, model.b1, model.w2,
                                      model.b2, dis_is_one=True)
    assert loss_dis_a.shape == (N_a, 1) and loss_enc_a.shape == (N_a, 1)
    assert jnp.allclose(loss_dis_a, ref_dis_a, atol=2e-3, rtol=2e-3)
    assert jnp.allclose(loss_enc_a, ref_enc_a, atol=2e-3, rtol=2e-3)
    # Loose check vs full-f32 (torch-exact) math: only bf16 MXU inputs differ.
    f32_dis_a, f32_enc_a = _reference(hid_a, model.w1, model.b1, model.w2,
                                      model.b2, dis_is_one=True,
                                      matmul_dtype=jnp.float32)
    assert jnp.allclose(loss_dis_a, f32_dis_a, atol=5e-2, rtol=5e-2)
    assert jnp.allclose(loss_enc_a, f32_enc_a, atol=5e-2, rtol=5e-2)

    # --- Case B: lang differs, bf16 streamed hid, ragged N (no padding) ----
    N_b = 200
    hid_b = jax.random.normal(k_hid_b, (N_b, H),
                              jnp.float32).astype(jnp.bfloat16)
    loss_dis_b, loss_enc_b = model("fr", hid_b)          # auto tile_n
    jax.block_until_ready((loss_dis_b, loss_enc_b))

    ref_dis_b, ref_enc_b = _reference(hid_b, model.w1, model.b1, model.w2,
                                      model.b2, dis_is_one=False)
    assert loss_dis_b.shape == (N_b, 1) and loss_enc_b.shape == (N_b, 1)
    assert jnp.allclose(loss_dis_b, ref_dis_b, atol=2e-3, rtol=2e-3)
    assert jnp.allclose(loss_enc_b, ref_enc_b, atol=2e-3, rtol=2e-3)
    assert bool(jnp.all(jnp.isfinite(loss_dis_b)))
    assert bool(jnp.all(jnp.isfinite(loss_enc_b)))

    print("KERNEL_OK")
</pallas_src>

<mosaic_0001>
module attributes {stable_mosaic.version = 11 : i64} {
  func.func @_xling_disc_kernel(%arg0: i32, %arg1: memref<128x32xf32, #tpu.memory_space<vmem>>, %arg2: memref<32x64xbf16, #tpu.memory_space<vmem>>, %arg3: memref<1x64xf32, #tpu.memory_space<vmem>>, %arg4: memref<64x1xbf16, #tpu.memory_space<vmem>>, %arg5: memref<1x1xf32, #tpu.memory_space<smem>>, %arg6: memref<1x128xf32, #tpu.memory_space<vmem>>, %arg7: memref<1x128xf32, #tpu.memory_space<vmem>>) attributes {dimension_semantics = [#tpu.dimension_semantics<parallel>], iteration_bounds = array<i64: 3>, scalar_prefetch = 0 : i64, scratch_operands = 0 : i64, tpu.core_type = #tpu.core_type<tc>, window_params = [{transform_indices = @transform_0, window_bounds = array<i64: 128, 32>}, {pipeline_mode = #tpu.pipeline_mode<synchronous>, transform_indices = @transform_1, window_bounds = array<i64: 32, 64>}, {pipeline_mode = #tpu.pipeline_mode<synchronous>, transform_indices = @transform_2, window_bounds = array<i64: 1, 64>}, {pipeline_mode = #tpu.pipeline_mode<synchronous>, transform_indices = @transform_3, window_bounds = array<i64: 64, 1>}, {transform_indices = @transform_4, window_bounds = array<i64: 1, 1>}, {transform_indices = @transform_5, window_bounds = array<i64: 1, 128>}, {transform_indices = @transform_6, window_bounds = array<i64: 1, 128>}]} {
    %c0 = arith.constant 0 : index
    %c0_0 = arith.constant 0 : index
    %0 = vector.load %arg1[%c0, %c0_0] : memref<128x32xf32, #tpu.memory_space<vmem>>, vector<128x32xf32>
    %1 = arith.truncf %0 : vector<128x32xf32> to vector<128x32xbf16>
    %c0_1 = arith.constant 0 : index
    %c0_2 = arith.constant 0 : index
    %2 = vector.load %arg2[%c0_1, %c0_2] : memref<32x64xbf16, #tpu.memory_space<vmem>>, vector<32x64xbf16>
    %cst = arith.constant dense<0.000000e+00> : vector<128x64xf32>
    %3 = tpu.matmul %1, %2, %cst {dimension_numbers = #tpu.dot_dimension_numbers<[1], [0], [0], [1], [0, 0, 1, 1], [], []>} : vector<128x32xbf16>, vector<32x64xbf16>, vector<128x64xf32> -> vector<128x64xf32>
    %c0_3 = arith.constant 0 : index
    %c0_4 = arith.constant 0 : index
    %4 = vector.load %arg3[%c0_3, %c0_4] : memref<1x64xf32, #tpu.memory_space<vmem>>, vector<1x64xf32>
    %5 = vector.broadcast %4 : vector<1x64xf32> to vector<128x64xf32>
    %6 = arith.addf %3, %5 : vector<128x64xf32>
    %cst_5 = arith.constant 0.000000e+00 : f32
    %7 = vector.broadcast %cst_5 : f32 to vector<128x64xf32>
    %8 = arith.maximumf %6, %7 : vector<128x64xf32>
    %9 = arith.truncf %8 : vector<128x64xf32> to vector<128x64xbf16>
    %c0_6 = arith.constant 0 : index
    %c0_7 = arith.constant 0 : index
    %10 = vector.load %arg4[%c0_6, %c0_7] : memref<64x1xbf16, #tpu.memory_space<vmem>>, vector<64x1xbf16>
    %cst_8 = arith.constant dense<0.000000e+00> : vector<128x1xf32>
    %11 = tpu.matmul %9, %10, %cst_8 {dimension_numbers = #tpu.dot_dimension_numbers<[1], [0], [0], [1], [0, 0, 1, 1], [], []>} : vector<128x64xbf16>, vector<64x1xbf16>, vector<128x1xf32> -> vector<128x1xf32>
    %c0_9 = arith.constant 0 : index
    %c0_10 = arith.constant 0 : index
    %12 = memref.load %arg5[%c0_9, %c0_10] : memref<1x1xf32, #tpu.memory_space<smem>>
    %13 = vector.broadcast %12 : f32 to vector<128x1xf32>
    %14 = arith.addf %11, %13 : vector<128x1xf32>
    %15 = tpu.transpose %14, [1, 0] : vector<128x1xf32> -> vector<1x128xf32>
    %cst_11 = arith.constant 0.000000e+00 : f32
    %16 = vector.broadcast %cst_11 : f32 to vector<1x128xf32>
    %17 = arith.subf %16, %15 : vector<1x128xf32>
    %cst_12 = arith.constant 0.000000e+00 : f32
    %18 = vector.broadcast %cst_12 : f32 to vector<1x128xf32>
    %19 = arith.maximumf %17, %18 : vector<1x128xf32>
    %20 = math.absf %15 : vector<1x128xf32>
    %cst_13 = arith.constant 0.000000e+00 : f32
    %21 = vector.broadcast %cst_13 : f32 to vector<1x128xf32>
    %22 = arith.subf %21, %20 : vector<1x128xf32>
    %23 = math.exp %22 : vector<1x128xf32>
    %24 = math.log1p %23 : vector<1x128xf32>
    %25 = arith.addf %19, %24 : vector<1x128xf32>
    %c0_14 = arith.constant 0 : index
    %c0_15 = arith.constant 0 : index
    %26 = vector.load %arg6[%c0_14, %c0_15] : memref<1x128xf32, #tpu.memory_space<vmem>>, vector<1x128xf32>
    tpu.vector_store %arg6[%c0_14, %c0_15], %25 {strides = array<i32>} : memref<1x128xf32, #tpu.memory_space<vmem>>, vector<1x128xf32>,
    %27 = arith.addf %15, %25 : vector<1x128xf32>
    %c0_16 = arith.constant 0 : index
    %c0_17 = arith.constant 0 : index
    %28 = vector.load %arg7[%c0_16, %c0_17] : memref<1x128xf32, #tpu.memory_space<vmem>>, vector<1x128xf32>
    tpu.vector_store %arg7[%c0_16, %c0_17], %27 {strides = array<i32>} : memref<1x128xf32, #tpu.memory_space<vmem>>, vector<1x128xf32>,
    return
  }
  func.func @transform_0(%arg0: i32) -> (i32, i32) {
    %c0_i32 = arith.constant 0 : i32
    %c0_i32_0 = arith.constant 0 : i32
    return %arg0, %c0_i32 : i32, i32
  }
  func.func @transform_1(%arg0: i32) -> (i32, i32) {
    %c0_i32 = arith.constant 0 : i32
    %c0_i32_0 = arith.constant 0 : i32
    %c0_i32_1 = arith.constant 0 : i32
    return %c0_i32, %c0_i32_0 : i32, i32
  }
  func.func @transform_2(%arg0: i32) -> (i32, i32) {
    %c0_i32 = arith.constant 0 : i32
    %c0_i32_0 = arith.constant 0 : i32
    %c0_i32_1 = arith.constant 0 : i32
    return %c0_i32, %c0_i32_0 : i32, i32
  }
  func.func @transform_3(%arg0: i32) -> (i32, i32) {
    %c0_i32 = arith.constant 0 : i32
    %c0_i32_0 = arith.constant 0 : i32
    %c0_i32_1 = arith.constant 0 : i32
    return %c0_i32, %c0_i32_0 : i32, i32
  }
  func.func @transform_4(%arg0: i32) -> (i32, i32) {
    %c0_i32 = arith.constant 0 : i32
    %c0_i32_0 = arith.constant 0 : i32
    %c0_i32_1 = arith.constant 0 : i32
    return %c0_i32, %c0_i32_0 : i32, i32
  }
  func.func @transform_5(%arg0: i32) -> (i32, i32) {
    %c0_i32 = arith.constant 0 : i32
    %c0_i32_0 = arith.constant 0 : i32
    return %c0_i32, %arg0 : i32, i32
  }
  func.func @transform_6(%arg0: i32) -> (i32, i32) {
    %c0_i32 = arith.constant 0 : i32
    %c0_i32_0 = arith.constant 0 : i32
    return %c0_i32, %arg0 : i32, i32
  }
}

</mosaic_0001>

<bundles_post_ra>
// kernel: tpu_custom_call.1
= control target key start
LH: loop header
LB: loop body
LE: loop exit
PB: predicated region body
PF: predicated region fallthrough
CT: control target
= control target key end

     0   :  { %s1252_s0 = inlined_call_operand.vmem [shape: f32[384,32], index: 0, kind: input, shape index: {}]   ;;  %s1253_s1 = inlined_call_operand.vmem [shape: bf16[32,64], index: 1, kind: input, shape index: {}]   ;;  %s1254_s2 = inlined_call_operand.vmem [shape: f32[1,64], index: 2, kind: input, shape index: {}]   ;;  %s1255_s3 = inlined_call_operand.vmem [shape: bf16[64,1], index: 3, kind: input, shape index: {}]   ;;  %s1256_s4 = inlined_call_operand.<no memory space> [shape: f32[1,1], index: 4, kind: input, shape index: {}]   ;;  %s1257_s5 = inlined_call_operand.hbm [shape: f32[1,384], index: 5, kind: output, shape index: {0}]   ;;  %s1258_s6 = inlined_call_operand.hbm [shape: f32[1,384], index: 6, kind: output, shape index: {1}]  }
   0x1   :  { %12 = sst [smem:[#allocation2]] %s1256_s4 }
   0x2   :  { %13 = vsyncpa [#allocation4], 0 }
   0x3   :  { %15 = vsyncpa [#allocation4 + $0x1], 0 }
   0x4   :  { %16 = vsyncpa [#allocation6], 0 }
   0x5   :  { %18 = vsyncpa [#allocation6 + $0x1], 0  ;;  %s1061_s23 = smov 0   ;;  %s1063_s24 = smov 0  }
   0x6   :  { %s1065_s25 = smov 0   ;;  %s1067_s26 = smov 0  }
   0x7 LB: > { %s775_s4 = sadd.s32 4294967295, %s1019_s26   ;;  %s776_s27 = sadd.s32 4294967294, %s1019_s26   ;;  %s1019_s26 = sphi %s1067_s26, %s1264_s26   ;;  %s1015_s25 = sphi %s1065_s25, %s1263_s25   ;;  %s1011_s24 = sphi %s1063_s24, %s1262_s24   ;;  %s1007_s23 = sphi %s1061_s23, %s1261_s23  }
   0x8   : > { %s1084_s28 = sadd.s32 1, %s1019_s26   ;;  %s141_s29 = sadd.s32 1, %s1015_s25 }
   0x9   : > { %s138_s30 = ssub.s32 %s1019_s26, %s1084_s28  ;;  %p151_p0 = scmp.ne.s32.totalorder %s1015_s25, %s1011_s24 }
   0xa   : > { %p139_p1 = scmp.eq.s32.totalorder %s138_s30, 0  ;;  %p152_p2 = scmp.eq.s32.totalorder %s775_s4, 2 }
   0xb   : > { %p157_p3 = scmp.ne.s32.totalorder %s1011_s24, %s1007_s23  ;;  %p158_p4 = scmp.eq.s32.totalorder %s776_s27, 2 }
   0xc   : > { %s1094_s7 = scalar_select %p139_p1, %s1015_s25, %s141_s29  }
   0xd   : > { %p1096_p5 = por %p152_p2, %p151_p0  ;;  %p1100_p6 = por %p158_p4, %p157_p3 }
   0xe   : > { %p779_p7 = scmp.ge.s32.totalorder %s1019_s26, 1  ;;  %p223_p8 = scmp.lt.s32.totalorder %s1019_s26, 4 }
  0x10   : > { %p224_p9 = pnand %p779_p7, %p223_p8 }
  0x11   : > { %s1109_s12 = sshll.u32 (!%p224_p9), %s775_s4, 4  ;;  %s464_s14 = sld [smem:[#allocation2]] (!%p224_p9) }
  0x12   : > { %227 = sbr.rel (%p224_p9) target bundleno = 636 (0x27c), region = 40  ;;  %p257_p10 = scmp.lt.s32.totalorder (!%p224_p9), %s1109_s12, 47 }
  0x13   : > { %s1169_s15 = sand.u32 (!%p224_p9), 1, %s1011_s24   ;;  %s1179_s22 = scalar_lea.hbm (!%p224_p9), %s1257_s5, %s1109_s12 }
  0x14   : > { %s249_s16 = scalar_lea.vmem (!%p224_p9), [#allocation3], %s1169_s15  ;;  %s1187_s29 = scalar_lea.hbm (!%p224_p9), %s1258_s6, %s1109_s12 }
  0x15   : > { %s664_s30 = scalar_lea.sflag (!%p224_p9), [#allocation4], %s1169_s15  ;;  %s1021_s11 = smov (!%p224_p9), [#allocation3]  }
  0x16   : > { %s933_s13 = sshll.u32 (!%p224_p9), %s1021_s11, 4  ;;  %s934_s13 = int_to_ptr.vmem [resolvable:$false] %s933_s13 }
  0x17   : > { %v919_v0 = vld [vmem:[%s1253_s1 + $0x8] sm:$0xff]   ;;  %v920_v1 = vld [vmem:[%s1253_s1] sm:$0xff]   ;;  %v921_v2 = vld [vmem:[%s1255_s3 + $0x18] sm:$0xff]   ;;  %s258_s17 = scalar_select %p257_p10, %s1109_s12, 47  ;;  %vm310_vm0 = vcmask 261120   ;;  %vm490_vm1 = vcmask 523264  }
  0x18   : > { %831 = vmatprep.subr.bf16.mxu0 %v919_v0  ;;  %851 = vmatprep.subr.bf16.mxu1 %v921_v2  ;;  %v922_v27 = vld [vmem:[%s1255_s3 + $0x10] sm:$0xff]   ;;  %v923_v28 = vld [vmem:[%s1255_s3 + $0x8] sm:$0xff]   ;;  %v924_v29 = vld [vmem:[%s1255_s3] sm:$0xff]  }
  0x19   : > { %832 = vmatpush3.bf16.msra.mxu0 %v919_v0  ;;  %s781_s18 = sshll.u32 %s258_s17, 3  ;;  %852 = vmatpush3.bf16.msra.mxu1 %v921_v2  ;;  %v782_v32 = vld [vmem:[%s1254_s2] ss:$0 sm:$0xff]  ;;  %s680_s17 = sshll.u32 %s249_s16, 4  ;;  %s1181_s17 = int_to_ptr.vmem [resolvable:$true] %s680_s17 }
  0x1a   : > { %833 = vmatprep.subr.bf16.mxu0 %v920_v1  ;;  %s1122_s21 = scalar_lea.vmem %s1252_s0, %s781_s18  ;;  %853 = vmatprep.subr.bf16.mxu1 %v922_v27  ;;  %s255_s18 = scalar_lea.vmem [#allocation5], %s1169_s15 }
  0x1b   : > { %v263_v3 = vld [vmem:[%s1122_s21] sm:$0xff]  ;;  %v264_v4 = vld [vmem:[%s1122_s21 + $0x8] sm:$0xff]  ;;  %v265_v5 = vld [vmem:[%s1122_s21 + $0x10] sm:$0xff]  ;;  %s693_s19 = sshll.u32 %s255_s18, 4  ;;  %s929_s10 = scalar_lea.vmem %s1181_s17, 16  ;;  %s1189_s19 = int_to_ptr.vmem [resolvable:$true] %s693_s19 }
  0x1c   : > { %v279_v6 = vpack.c.bf16 %v264_v4, %v263_v3  ;;  %v266_v7 = vld [vmem:[%s1122_s21 + $0x18] sm:$0xff]  ;;  %v267_v8 = vld [vmem:[%s1122_s21 + $0x20] sm:$0xff]  ;;  %v268_v9 = vld [vmem:[%s1122_s21 + $0x28] sm:$0xff]  ;;  %p930_p11 = scmp.ne.s32.totalorder %s1181_s17, %s929_s10  ;;  %p936_p0 = scmp.lt.s32.totalorder %s1181_s17, %s934_s13 }
  0x1d   : > { %834 = vmatpush3.bf16.msra.mxu0 %v920_v1  ;;  %v280_v10 = vpack.c.bf16 %v266_v7, %v265_v5  ;;  %v281_v11 = vpack.c.bf16 %v268_v9, %v267_v8  ;;  %v269_v12 = vld [vmem:[%s1122_s21 + $0x30] sm:$0xff]  ;;  %v270_v13 = vld [vmem:[%s1122_s21 + $0x38] sm:$0xff]  ;;  %v271_v14 = vld [vmem:[%s1122_s21 + $0x40] sm:$0xff]  ;;  %854 = vmatpush3.bf16.msra.mxu1 %v922_v27 }
  0x1e   : > { %835 = vmatprep.mubr.msk.bf16.mxu0 %vm310_vm0, %v279_v6  ;;  %v272_v15 = vld [vmem:[%s1122_s21 + $0x48] sm:$0xff]  ;;  %v282_v16 = vpack.c.bf16 %v270_v13, %v269_v12  ;;  %v273_v18 = vld [vmem:[%s1122_s21 + $0x50] sm:$0xff]  ;;  %v274_v19 = vld [vmem:[%s1122_s21 + $0x58] sm:$0xff]  ;;  %855 = vmatprep.subr.bf16.mxu1 %v923_v28  ;;  %p931_p12 = pnand %p930_p11, %p1096_p5 }
  0x1f   : > { %v283_v17 = vpack.c.bf16 %v272_v15, %v271_v14  ;;  %v275_v20 = vld [vmem:[%s1122_s21 + $0x60] sm:$0xff]  ;;  %v276_v21 = vld [vmem:[%s1122_s21 + $0x68] sm:$0xff]  ;;  %v284_v22 = vpack.c.bf16 %v274_v19, %v273_v18  ;;  %v277_v24 = vld [vmem:[%s1122_s21 + $0x70] sm:$0xff] }
  0x20   : > { %836 = vmatmul.mubr.msk.bf16.vlgmr.msra.gmra.mxu0 %vm310_vm0, %v280_v10  ;;  %v285_v23 = vpack.c.bf16 %v276_v21, %v275_v20  ;;  %v278_v25 = vld [vmem:[%s1122_s21 + $0x78] sm:$0xff]  ;;  %p932_p13 = pneg %p931_p12 }
  0x21   : > { %839 = vmatprep.mubr.msk.bf16.mxu0 %vm310_vm0, %v281_v11  ;;  %v286_v26 = vpack.c.bf16 %v278_v25, %v277_v24  ;;  %856 = vmatpush3.bf16.msra.mxu1 %v923_v28  ;;  %v465_v24 = vstv %s464_s14  ;;  %s935_s14 = scalar_lea.vmem %s934_s13, 32 }
  0x22   : > { %857 = vmatprep.subr.bf16.mxu1 %v924_v29  ;;  %p937_p1 = scmp.lt.s32.totalorder %s935_s14, %s929_s10 }
  0x24   : > { %p938_p2 = por %p937_p1, %p936_p0 }
  0x25   : > { %858 = vmatpush3.bf16.msra.mxu1 %v924_v29 }
  0x26   : > { %p939_p3 = pnand %p938_p2, %p932_p13 }
  0x28   : > { %840 = vmatmul.mubr.msk.bf16.gmra.mxu0 %vm310_vm0, %v282_v16 }
  0x29   : > { %843 = vmatprep.mubr.msk.bf16.mxu0 %vm310_vm0, %v283_v17 }
  0x30   : > { %844 = vmatmul.mubr.msk.bf16.gmra.mxu0 %vm310_vm0, %v284_v22 }
  0x31   : > { %847 = vmatprep.mubr.msk.bf16.mxu0 %vm310_vm0, %v285_v23 }
  0x38   : > { %848 = vmatmul.mubr.msk.bf16.gmra.mxu0 %vm310_vm0, %v286_v26 }
  0xe0   : > { %v837_v30 = vpop.f32.mrf.mxu0 }
  0xe1   : > { %v378_v36 = vadd.f32 %v837_v30, %v782_v32 }
  0xe2   : > { %v369_v31 = vpop.f32.mrf.mxu0 }
  0xe3   : > { %v370_v34 = vadd.f32 %v782_v32, %v369_v31  ;;  %v434_v43 = vmax.f32 %v378_v36, 0.0 }
  0xe4   : > { %v838_v33 = vpop.f32.mrf.mxu0 }
  0xe5   : > { %v381_v35 = vadd.f32 %v838_v33, %v782_v32  ;;  %v432_v41 = vmax.f32 %v370_v34, 0.0 }
  0xe6   : > { %v372_v37 = vpop.f32.mrf.mxu0 }
  0xe7   : > { %v373_v38 = vadd.f32 %v782_v32, %v372_v37  ;;  %v435_v39 = vmax.f32 %v381_v35, 0.0 }
  0xe8   : > { %v841_v40 = vpop.f32.mrf.mxu0 }
  0xe9   : > { %v433_v42 = vmax.f32 %v373_v38, 0.0  ;;  %v394_v44 = vadd.f32 %v841_v40, %v782_v32  ;;  %v449_v48 = vpack.c.bf16 %v435_v39, %v434_v43 }
  0xea   : > { %v385_v45 = vpop.f32.mrf.mxu0 }
  0xeb   : > { %v386_v46 = vadd.f32 %v782_v32, %v385_v45  ;;  %v448_v47 = vpack.c.bf16 %v433_v42, %v432_v41  ;;  %v438_v51 = vmax.f32 %v394_v44, 0.0 }
  0xec   : > { %v842_v49 = vpop.f32.mrf.mxu0 }
  0xed   : > { %v397_v50 = vadd.f32 %v842_v49, %v782_v32  ;;  %859 = vmatprep.mubr.msk.bf16.mxu1 %vm490_vm1, %v448_v47  ;;  %v436_v53 = vmax.f32 %v386_v46, 0.0 }
  0xee   : > { %v388_v52 = vpop.f32.mrf.mxu0  ;;  %860 = vmatmul.mubr.msk.bf16.vlgmr.msra.gmra.mxu1 %vm490_vm1, %v449_v48 }
  0xef   : > { %v439_v54 = vmax.f32 %v397_v50, 0.0  ;;  %v389_v55 = vadd.f32 %v782_v32, %v388_v52 }
  0xf0   : > { %v845_v56 = vpop.f32.mrf.mxu0 }
  0xf1   : > { %v437_v57 = vmax.f32 %v389_v55, 0.0  ;;  %v451_v58 = vpack.c.bf16 %v439_v54, %v438_v51  ;;  %v410_v59 = vadd.f32 %v845_v56, %v782_v32 }
  0xf2   : > { %v401_v60 = vpop.f32.mrf.mxu0 }
  0xf3   : > { %v450_v61 = vpack.c.bf16 %v437_v57, %v436_v53  ;;  %v402_v62 = vadd.f32 %v782_v32, %v401_v60  ;;  %v442_v1 = vmax.f32 %v410_v59, 0.0 }
  0xf4   : > { %v846_v63 = vpop.f32.mrf.mxu0 }
  0xf5   : > { %863 = vmatprep.mubr.msk.bf16.mxu1 %vm490_vm1, %v450_v61  ;;  %v413_v0 = vadd.f32 %v846_v63, %v782_v32  ;;  %v440_v3 = vmax.f32 %v402_v62, 0.0 }
  0xf6   : > { %864 = vmatmul.mubr.msk.bf16.gmra.mxu1 %vm490_vm1, %v451_v58  ;;  %v404_v2 = vpop.f32.mrf.mxu0 }
  0xf7   : > { %v443_v4 = vmax.f32 %v413_v0, 0.0  ;;  %v405_v5 = vadd.f32 %v782_v32, %v404_v2 }
  0xf8   : > { %v849_v6 = vpop.f32.mrf.mxu0 }
  0xf9   : > { %v441_v7 = vmax.f32 %v405_v5, 0.0  ;;  %v453_v8 = vpack.c.bf16 %v443_v4, %v442_v1  ;;  %v426_v9 = vadd.f32 %v849_v6, %v782_v32 }
  0xfa   : > { %v417_v10 = vpop.f32.mrf.mxu0 }
  0xfb   : > { %v452_v11 = vpack.c.bf16 %v441_v7, %v440_v3  ;;  %v418_v12 = vadd.f32 %v782_v32, %v417_v10  ;;  %v446_v15 = vmax.f32 %v426_v9, 0.0 }
  0xfc   : > { %v850_v13 = vpop.f32.mrf.mxu0 }
  0xfd   : > { %867 = vmatprep.mubr.msk.bf16.mxu1 %vm490_vm1, %v452_v11  ;;  %v429_v14 = vadd.f32 %v850_v13, %v782_v32  ;;  %v444_v17 = vmax.f32 %v418_v12, 0.0 }
  0xfe   : > { %868 = vmatmul.mubr.msk.bf16.gmra.mxu1 %vm490_vm1, %v453_v8  ;;  %v420_v16 = vpop.f32.mrf.mxu0 }
  0xff   : > { %v447_v18 = vmax.f32 %v429_v14, 0.0  ;;  %v421_v19 = vadd.f32 %v782_v32, %v420_v16 }
 0x101   : > { %v445_v20 = vmax.f32 %v421_v19, 0.0  ;;  %v455_v21 = vpack.c.bf16 %v447_v18, %v446_v15 }
 0x103   : > { %v454_v22 = vpack.c.bf16 %v445_v20, %v444_v17 }
 0x105   : > { %871 = vmatprep.mubr.msk.bf16.mxu1 %vm490_vm1, %v454_v22 }
 0x106   : > { %872 = vmatmul.mubr.msk.bf16.gmra.mxu1 %vm490_vm1, %v455_v21 }
 0x1ae   : > { %v861_v23 = vpop.f32.mrf.mxu1 }
 0x1af   : > { %v558_v31 = vadd.f32 %v861_v23, %v465_v24 }
 0x1b0   : > { %v549_v25 = vpop.f32.mrf.mxu1 }
 0x1b1   : > { %v550_v26 = vadd.f32 %v549_v25, %v465_v24 }
 0x1b2   : > { %v862_v27 = vpop.f32.mrf.mxu1 }
 0x1b3   : > { %612 = vxpose.xlu0.b32.start [1/16] (narrow) %v550_v26, 8  ;;  %v561_v33 = vadd.f32 %v862_v27, %v465_v24 }
 0x1b4   : > { %v552_v28 = vpop.f32.mrf.mxu1 }
 0x1b5   : > { %v553_v29 = vadd.f32 %v552_v28, %v465_v24 }
 0x1b6   : > { %v865_v30 = vpop.f32.mrf.mxu1 }
 0x1b7   : > { %613 = vxpose.xlu0.b32.cont [2/16] (narrow) %v553_v29, 8  ;;  %v574_v39 = vadd.f32 %v865_v30, %v465_v24 }
 0x1b8   : > { %v565_v32 = vpop.f32.mrf.mxu1 }
 0x1b9   : > { %v566_v35 = vadd.f32 %v565_v32, %v465_v24 }
 0x1ba   : > { %v866_v34 = vpop.f32.mrf.mxu1 }
 0x1bb   : > { %614 = vxpose.xlu0.b32.cont [3/16] (narrow) %v558_v31, 8  ;;  %v577_v41 = vadd.f32 %v866_v34, %v465_v24 }
 0x1bc   : > { %v568_v36 = vpop.f32.mrf.mxu1 }
 0x1bd   : > { %v569_v37 = vadd.f32 %v568_v36, %v465_v24 }
 0x1be   : > { %v869_v38 = vpop.f32.mrf.mxu1 }
 0x1bf   : > { %615 = vxpose.xlu0.b32.cont [4/16] (narrow) %v561_v33, 8  ;;  %v590_v47 = vadd.f32 %v869_v38, %v465_v24 }
 0x1c0   : > { %v581_v40 = vpop.f32.mrf.mxu1 }
 0x1c1   : > { %v582_v43 = vadd.f32 %v581_v40, %v465_v24 }
 0x1c2   : > { %v870_v42 = vpop.f32.mrf.mxu1 }
 0x1c3   : > { %616 = vxpose.xlu0.b32.cont [5/16] (narrow) %v566_v35, 8  ;;  %v593_v49 = vadd.f32 %v870_v42, %v465_v24 }
 0x1c4   : > { %v584_v44 = vpop.f32.mrf.mxu1 }
 0x1c5   : > { %v585_v45 = vadd.f32 %v584_v44, %v465_v24 }
 0x1c6   : > { %v873_v46 = vpop.f32.mrf.mxu1 }
 0x1c7   : > { %617 = vxpose.xlu0.b32.cont [6/16] (narrow) %v569_v37, 8  ;;  %v606_v54 = vadd.f32 %v873_v46, %v465_v24 }
 0x1c8   : > { %v597_v48 = vpop.f32.mrf.mxu1 }
 0x1c9   : > { %v598_v51 = vadd.f32 %v597_v48, %v465_v24 }
 0x1ca   : > { %v874_v50 = vpop.f32.mrf.mxu1 }
 0x1cb   : > { %618 = vxpose.xlu0.b32.cont [7/16] (narrow) %v574_v39, 8  ;;  %v609_v55 = vadd.f32 %v874_v50, %v465_v24 }
 0x1cc   : > { %v600_v52 = vpop.f32.mrf.mxu1 }
 0x1cd   : > { %v601_v53 = vadd.f32 %v600_v52, %v465_v24 }
 0x1cf   : > { %619 = vxpose.xlu0.b32.cont [8/16] (narrow) %v577_v41, 8 }
 0x1d3   : > { %620 = vxpose.xlu0.b32.cont [9/16] (narrow) %v582_v43, 8 }
 0x1d7   : > { %621 = vxpose.xlu0.b32.cont [10/16] (narrow) %v585_v45, 8 }
 0x1db   : > { %622 = vxpose.xlu0.b32.cont [11/16] (narrow) %v590_v47, 8 }
 0x1df   : > { %623 = vxpose.xlu0.b32.cont [12/16] (narrow) %v593_v49, 8 }
 0x1e3   : > { %624 = vxpose.xlu0.b32.cont [13/16] (narrow) %v598_v51, 8 }
 0x1e7   : > { %625 = vxpose.xlu0.b32.cont [14/16] (narrow) %v601_v53, 8 }
 0x1eb   : > { %626 = vxpose.xlu0.b32.cont [15/16] (narrow) %v606_v54, 8 }
 0x1ef   : > { %627 = vxpose.xlu0.b32.end [16/16] (narrow) %v609_v55, 8 }
 0x22f   : > { %v628_v56 = vpop.trf.xlu0 }
 0x230   : > { %v646_v57 = vand.u32 2147483647, %v628_v56  ;;  %v644_v0 = vsub.f32 0.0, %v628_v56 }
 0x232   : > { %v647_v58 = vsub.f32 0.0, %v646_v57  ;;  %v645_v5 = vmax.f32 %v644_v0, 0.0 }
 0x234   : > { %v648_v59 = vmul.f32 1.442695, %v647_v58 }
 0x236   : > { %925 = vpow2.f32 %v648_v59 }
 0x243   : > { %v926_v60 = vpop.eup %925 }
 0x244   : > { %v650_v61 = vadd.f32 1.0, %v926_v60  ;;  %v653_v62 = vmul.f32 -0.5, %v926_v60  ;;  %v656_v1 = vand.u32 2147483647, %v926_v60 }
 0x246   : > { %927 = vlog2.f32 %v650_v61  ;;  %v654_v63 = vadd.f32 1.0, %v653_v62  ;;  %vm657_vm2 = vcmp.lt.f32.partialorder %v656_v1, 0.0004427343 }
 0x248   : > { %v655_v4 = vmul.f32 %v926_v60, %v654_v63 }
 0x253   : > { %v928_v2 = vpop.eup %927 }
 0x254   : > { %v652_v3 = vmul.f32 0.6931472, %v928_v2 }
 0x256   : > { %v658_v6 = vsel %vm657_vm2, %v655_v4, %v652_v3 }
 0x257   : > { %v659_v7 = vadd.f32 %v658_v6, %v645_v5 }
 0x259   : > { %v661_v8 = vadd.f32 %v659_v7, %v628_v56  ;;  %660 = vst [vmem:[%s249_s16] sm:$0x1] %v659_v7 }
 0x25a   : > { %942 = shalt.err (!%p939_p3)
}
 0x25b   : > { %s943_s12 = scalar_lea.hbm %s1179_s22, 16  ;;  %s947_s21 = scalar_lea.hbm %s1257_s5, 48 }
 0x25c   : > { %p944_p4 = scmp.ne.s32.totalorder %s1179_s22, %s943_s12  ;;  %p948_p9 = scmp.lt.s32.totalorder %s1179_s22, %s1257_s5 }
 0x25d   : > { %p949_p10 = scmp.lt.s32.totalorder %s947_s21, %s943_s12 }
 0x25e   : > { %p945_p7 = pnand %p944_p4, %p1096_p5 }
 0x25f   : > { %p950_p11 = por %p949_p10, %p948_p9 }
 0x260   : > { %p946_p8 = pneg %p945_p7 }
 0x262   : > { %p951_p12 = pnand %p950_p11, %p946_p8 }
 0x264   : > { %954 = shalt.err (!%p951_p12)
}
 0x265   : > { %875 = dma.vmem_to_hbm [thread:$0]  (%p1096_p5), %s1181_s17, 16, %s1179_s22, %s664_s30   ;;  %662 = vst [vmem:[%s255_s18] sm:$0x1] %v661_v8 }
 0x266   : > { %s668_s10 = scalar_lea.sflag [#allocation6], %s1169_s15  ;;  %s955_s11 = scalar_lea.vmem %s1189_s19, 16 }
 0x267   : > { %p956_p13 = scmp.ne.s32.totalorder %s1189_s19, %s955_s11  ;;  %s1022_s13 = smov [#allocation5]  }
 0x268   : > { %s959_s14 = sshll.u32 %s1022_s13, 4  ;;  %s960_s14 = int_to_ptr.vmem [resolvable:$false] %s959_s14 }
 0x269   : > { %p957_p0 = pnand %p956_p13, %p1096_p5  ;;  %s961_s12 = scalar_lea.vmem %s960_s14, 32 }
 0x26a   : > { %p962_p2 = scmp.lt.s32.totalorder %s1189_s19, %s960_s14  ;;  %p963_p3 = scmp.lt.s32.totalorder %s961_s12, %s955_s11 }
 0x26b   : > { %p958_p1 = pneg %p957_p0 }
 0x26c   : > { %p964_p4 = por %p963_p3, %p962_p2 }
 0x26e   : > { %p965_p7 = pnand %p964_p4, %p958_p1 }
 0x270   : > { %968 = shalt.err (!%p965_p7)
}
 0x271   : > { %s969_s17 = scalar_lea.hbm %s1187_s29, 16  ;;  %s973_s22 = scalar_lea.hbm %s1258_s6, 48 }
 0x272   : > { %p970_p8 = scmp.ne.s32.totalorder %s1187_s29, %s969_s17  ;;  %p974_p11 = scmp.lt.s32.totalorder %s1187_s29, %s1258_s6 }
 0x273   : > { %p975_p12 = scmp.lt.s32.totalorder %s973_s22, %s969_s17 }
 0x274   : > { %p971_p9 = pnand %p970_p8, %p1096_p5 }
 0x275   : > { %p976_p13 = por %p975_p12, %p974_p11 }
 0x276   : > { %p972_p10 = pneg %p971_p9 }
 0x278   : > { %p977_p0 = pnand %p976_p13, %p972_p10 }
 0x27a   : > { %980 = shalt.err (!%p977_p0)
}
 0x27b   : > { %876 = dma.vmem_to_hbm [thread:$0]  (%p1096_p5), %s1189_s19, 16, %s1187_s29, %s668_s10  }
 0x27c PF: > { %p886_p1 = scmp.ge.s32.totalorder %s1019_s26, 2  ;;  %s705_s20 = sand.u32 1, %s1007_s23  }
 0x27d   : > { %s706_s21 = scalar_lea.sflag [#allocation4], %s705_s20 }
 0x27e   : > { %p880_p2 = pnand %p886_p1, %p1100_p6 }
 0x280   : > { %p881_p3 = pneg %p880_p2 }
 0x282   : > { %998 = dma.done.wait (%p881_p3), %s706_s21, 16  }
 0x283   : > { %1000 = vsyncadd (%p881_p3), %s706_s21, 4294967280  ;;  %s714_s4 = scalar_lea.sflag [#allocation6], %s705_s20 }
 0x284   : > { %1002 = dma.done.wait (%p881_p3), %s714_s4, 16  }
 0x285   : > { %1004 = vsyncadd (%p881_p3), %s714_s4, 4294967280  ;;  %p21_p5 = scmp.ge.s32.totalorder %s1084_s28, 5   ;;  %s1261_s23 = smov %s1011_s24 }
 0x286   : > { %s1262_s24 = smov %s1015_s25  ;;  %s1263_s25 = smov %s1094_s7 }
 0x287   : > { %s1264_s26 = smov %s1084_s28  ;;  %23 = sbr.rel (!%p21_p5) target bundleno = 7 (0x7), region = 92 }
 0x28c   :  { %718 = vsyncpa [#allocation4], 1 }
 0x28d   :  { %720 = vsyncpa [#allocation4 + $0x1], 1 }
 0x28e   :  { %721 = vsyncpa [#allocation6], 1 }
 0x28f   :  { %723 = vsyncpa [#allocation6 + $0x1], 1 }

</bundles_post_ra>
